<compile_context>
chip_gen: v7x
topology: tpu7x:2x2x1
jax: 0.10.0
libtpu: 0.0.40
codegen_flags: <defaults>
</compile_context>

<pallas_src>
import jax
import jax.numpy as jnp
from jax.experimental import pallas as pl


def ca_kernel(x_ref, p_ref, out_ref):
    """Single invocation, whole tensor resident in VMEM.

    x_ref   : (B, C, HW)      feature map, spatial on the lane axis
    p_ref   : (C, 3*CR + 1)   packed params: [w1 | w2^T | b2(col) | b1(row 0)]
    out_ref : (B, C, HW)
    """
    cr = (p_ref.shape[-1] - 1) // 3

    p = p_ref[...]                                  # one small DMA for all params
    w1 = p[:, 0:cr]                                 # (C, CR)  squeeze weight
    w2t = p[:, cr:2 * cr]                           # (C, CR)  excite weight (pre-transposed)
    b2c = p[:, 2 * cr:2 * cr + 1]                   # (C, 1)   excite bias (column)
    b1r = p[0:1, 2 * cr + 1:3 * cr + 1]             # (1, CR)  squeeze bias (row)

    # Static unroll over the (tiny) batch axis; each iteration is pure 2D math.
    for b in range(x_ref.shape[0]):
        xb = x_ref[b]                               # (C, HW)

        # Global average pool over spatial (lane reduce on the XLU).
        pooled = jnp.mean(xb, axis=-1, keepdims=True)            # (C, 1)

        # Squeeze 1x1 conv (C -> C/r) + ReLU.  Pathological MXU shape -> keep on
        # VPU broadcast-multiply + sublane reduce.
        z = jnp.sum(pooled * w1, axis=0, keepdims=True) + b1r    # (1, CR)
        z = jnp.maximum(z, 0.0)

        # Excite 1x1 conv (C/r -> C) + sigmoid; weight pre-transposed, so this is a
        # broadcast-multiply + lane reduce (no in-kernel transpose).
        g = jnp.sum(z * w2t, axis=-1, keepdims=True) + b2c       # (C, 1)
        gate = jax.nn.sigmoid(g)                                  # (C, 1)

        # Per-channel scaling of the feature map (lane-dense store).
        out_ref[b] = xb * gate


@jax.jit
def ca_layer(x_nchw, w1, b1, w2, b2):
    """CALayer forward.

    x_nchw : (B, C, H, W) float32, PyTorch layout.
    w1     : (C, CR)   == conv_du[0].weight[:, :, 0, 0].T
    b1     : (CR,) or (1, CR)
    w2     : (CR, C)   == conv_du[2].weight[:, :, 0, 0].T
    b2     : (C,) or (1, C)
    """
    b, c, h, w = x_nchw.shape
    hw = h * w
    cr = w1.shape[1]

    x2d = x_nchw.reshape(b, c, hw)                   # contiguous: spatial -> lanes

    # Pack all params into one (C, 3*CR + 1) slab: [w1 | w2^T | b2 col | b1 in row 0].
    b1_block = jnp.zeros((c, cr), x_nchw.dtype).at[0, :].set(b1.reshape(cr))
    pslab = jnp.concatenate(
        [w1, w2.T, b2.reshape(c, 1), b1_block], axis=1
    ).astype(x_nchw.dtype)                           # (C, 3*CR + 1)

    itemsize = x_nchw.dtype.itemsize
    cost = pl.CostEstimate(
        flops=3 * b * c * hw + 4 * b * c * cr,       # pool + scale dominate
        transcendentals=b * c,                       # sigmoid
        bytes_accessed=2 * b * c * hw * itemsize + pslab.size * itemsize,
    )

    out2d = pl.pallas_call(
        ca_kernel,
        out_shape=jax.ShapeDtypeStruct((b, c, hw), x_nchw.dtype),
        input_output_aliases={0: 0},                 # donate x2d's buffer to the output
        cost_estimate=cost,
    )(x2d, pslab)

    return out2d.reshape(b, c, h, w)


def reference(x_nchw, w1, b1, w2, b2):
    """Pure-JAX reference matching the PyTorch CALayer."""
    pooled = jnp.mean(x_nchw, axis=(2, 3))                       # (B, C)
    z = jax.nn.relu(pooled @ w1 + b1.reshape(1, -1))             # (B, CR)
    gate = jax.nn.sigmoid(z @ w2 + b2.reshape(1, -1))            # (B, C)
    return x_nchw * gate[:, :, None, None]


if __name__ == "__main__":
    # channel must be divisible by reduction (=16), so use C=32 -> CR=2.
    B, C, H, W = 2, 32, 16, 16
    RED = 16
    CR = C // RED

    key = jax.random.PRNGKey(0)
    ks = jax.random.split(key, 5)
    x = jax.random.normal(ks[0], (B, C, H, W), jnp.float32)
    w1 = jax.random.normal(ks[1], (C, CR), jnp.float32) * 0.1    # squeeze conv weight^T
    b1 = jax.random.normal(ks[2], (CR,), jnp.float32) * 0.1      # squeeze conv bias
    w2 = jax.random.normal(ks[3], (CR, C), jnp.float32) * 0.1    # excite conv weight^T
    b2 = jax.random.normal(ks[4], (C,), jnp.float32) * 0.1       # excite conv bias

    ref = reference(x, w1, b1, w2, b2)
    ref = jax.block_until_ready(ref)

    out = ca_layer(x, w1, b1, w2, b2)
    out = jax.block_until_ready(out)

    assert out.shape == x.shape
    err = float(jnp.max(jnp.abs(out - ref)))
    assert jnp.allclose(out, ref, rtol=1e-4, atol=1e-4), f"max abs err {err}"
    print("KERNEL_OK")
</pallas_src>

<mosaic_0001>
module attributes {stable_mosaic.version = 11 : i64} {
  func.func @ca_kernel(%arg0: memref<2x32x256xf32, #tpu.memory_space<vmem>>, %arg1: memref<32x7xf32, #tpu.memory_space<vmem>>, %arg2: memref<2x32x256xf32, #tpu.memory_space<vmem>>) attributes {dimension_semantics = [], scalar_prefetch = 0 : i64, scratch_operands = 0 : i64, tpu.core_type = #tpu.core_type<tc>} {
    %c0 = arith.constant 0 : index
    %c0_0 = arith.constant 0 : index
    %0 = vector.load %arg1[%c0, %c0_0] : memref<32x7xf32, #tpu.memory_space<vmem>>, vector<32x7xf32>
    %1 = vector.extract_strided_slice %0 {offsets = [0, 0], sizes = [32, 2], strides = [1, 1]} : vector<32x7xf32> to vector<32x2xf32>
    %2 = vector.extract_strided_slice %0 {offsets = [0, 2], sizes = [32, 2], strides = [1, 1]} : vector<32x7xf32> to vector<32x2xf32>
    %3 = vector.extract_strided_slice %0 {offsets = [0, 4], sizes = [32, 1], strides = [1, 1]} : vector<32x7xf32> to vector<32x1xf32>
    %4 = vector.extract_strided_slice %0 {offsets = [0, 5], sizes = [1, 2], strides = [1, 1]} : vector<32x7xf32> to vector<1x2xf32>
    %c0_1 = arith.constant 0 : index
    %c0_2 = arith.constant 0 : index
    %c0_3 = arith.constant 0 : index
    %5 = vector.load %arg0[%c0_1, %c0_2, %c0_3] : memref<2x32x256xf32, #tpu.memory_space<vmem>>, vector<1x32x256xf32>
    %6 = vector.shape_cast %5 : vector<1x32x256xf32> to vector<32x256xf32>
    %cst = arith.constant dense<0.000000e+00> : vector<32xf32>
    %7 = vector.multi_reduction <add>, %6, %cst [1] : vector<32x256xf32> to vector<32xf32>
    %8 = vector.shape_cast %7 : vector<32xf32> to vector<32x1xf32>
    %cst_4 = arith.constant 2.560000e+02 : f32
    %9 = vector.broadcast %cst_4 : f32 to vector<32x1xf32>
    %10 = arith.divf %8, %9 : vector<32x1xf32>
    %11 = vector.broadcast %10 : vector<32x1xf32> to vector<32x2xf32>
    %12 = arith.mulf %11, %1 : vector<32x2xf32>
    %cst_5 = arith.constant dense<0.000000e+00> : vector<2xf32>
    %13 = vector.multi_reduction <add>, %12, %cst_5 [0] : vector<32x2xf32> to vector<2xf32>
    %14 = vector.shape_cast %13 : vector<2xf32> to vector<1x2xf32>
    %15 = arith.addf %14, %4 : vector<1x2xf32>
    %cst_6 = arith.constant 0.000000e+00 : f32
    %16 = vector.broadcast %cst_6 : f32 to vector<1x2xf32>
    %17 = arith.maximumf %15, %16 : vector<1x2xf32>
    %18 = vector.broadcast %17 : vector<1x2xf32> to vector<32x2xf32>
    %19 = arith.mulf %18, %2 : vector<32x2xf32>
    %cst_7 = arith.constant dense<0.000000e+00> : vector<32xf32>
    %20 = vector.multi_reduction <add>, %19, %cst_7 [1] : vector<32x2xf32> to vector<32xf32>
    %21 = vector.shape_cast %20 : vector<32xf32> to vector<32x1xf32>
    %22 = arith.addf %21, %3 : vector<32x1xf32>
    %23 = arith.negf %22 : vector<32x1xf32>
    %24 = math.exp %23 : vector<32x1xf32>
    %cst_8 = arith.constant 1.000000e+00 : f32
    %25 = vector.broadcast %cst_8 : f32 to vector<32x1xf32>
    %26 = arith.addf %25, %24 : vector<32x1xf32>
    %27 = arith.divf %25, %26 : vector<32x1xf32>
    %28 = vector.broadcast %27 : vector<32x1xf32> to vector<32x256xf32>
    %29 = arith.mulf %6, %28 : vector<32x256xf32>
    %c0_9 = arith.constant 0 : index
    %c0_10 = arith.constant 0 : index
    %c0_11 = arith.constant 0 : index
    %30 = vector.load %arg2[%c0_9, %c0_10, %c0_11] : memref<2x32x256xf32, #tpu.memory_space<vmem>>, vector<1x32x256xf32>
    %31 = vector.shape_cast %30 : vector<1x32x256xf32> to vector<32x256xf32>
    %32 = vector.shape_cast %29 : vector<32x256xf32> to vector<1x32x256xf32>
    tpu.vector_store %arg2[%c0_9, %c0_10, %c0_11], %32 {strides = array<i32>} : memref<2x32x256xf32, #tpu.memory_space<vmem>>, vector<1x32x256xf32>,
    %c1 = arith.constant 1 : index
    %c0_12 = arith.constant 0 : index
    %c0_13 = arith.constant 0 : index
    %33 = vector.load %arg0[%c1, %c0_12, %c0_13] : memref<2x32x256xf32, #tpu.memory_space<vmem>>, vector<1x32x256xf32>
    %34 = vector.shape_cast %33 : vector<1x32x256xf32> to vector<32x256xf32>
    %cst_14 = arith.constant dense<0.000000e+00> : vector<32xf32>
    %35 = vector.multi_reduction <add>, %34, %cst_14 [1] : vector<32x256xf32> to vector<32xf32>
    %36 = vector.shape_cast %35 : vector<32xf32> to vector<32x1xf32>
    %cst_15 = arith.constant 2.560000e+02 : f32
    %37 = vector.broadcast %cst_15 : f32 to vector<32x1xf32>
    %38 = arith.divf %36, %37 : vector<32x1xf32>
    %39 = vector.broadcast %38 : vector<32x1xf32> to vector<32x2xf32>
    %40 = arith.mulf %39, %1 : vector<32x2xf32>
    %cst_16 = arith.constant dense<0.000000e+00> : vector<2xf32>
    %41 = vector.multi_reduction <add>, %40, %cst_16 [0] : vector<32x2xf32> to vector<2xf32>
    %42 = vector.shape_cast %41 : vector<2xf32> to vector<1x2xf32>
    %43 = arith.addf %42, %4 : vector<1x2xf32>
    %cst_17 = arith.constant 0.000000e+00 : f32
    %44 = vector.broadcast %cst_17 : f32 to vector<1x2xf32>
    %45 = arith.maximumf %43, %44 : vector<1x2xf32>
    %46 = vector.broadcast %45 : vector<1x2xf32> to vector<32x2xf32>
    %47 = arith.mulf %46, %2 : vector<32x2xf32>
    %cst_18 = arith.constant dense<0.000000e+00> : vector<32xf32>
    %48 = vector.multi_reduction <add>, %47, %cst_18 [1] : vector<32x2xf32> to vector<32xf32>
    %49 = vector.shape_cast %48 : vector<32xf32> to vector<32x1xf32>
    %50 = arith.addf %49, %3 : vector<32x1xf32>
    %51 = arith.negf %50 : vector<32x1xf32>
    %52 = math.exp %51 : vector<32x1xf32>
    %cst_19 = arith.constant 1.000000e+00 : f32
    %53 = vector.broadcast %cst_19 : f32 to vector<32x1xf32>
    %54 = arith.addf %53, %52 : vector<32x1xf32>
    %55 = arith.divf %53, %54 : vector<32x1xf32>
    %56 = vector.broadcast %55 : vector<32x1xf32> to vector<32x256xf32>
    %57 = arith.mulf %34, %56 : vector<32x256xf32>
    %c1_20 = arith.constant 1 : index
    %c0_21 = arith.constant 0 : index
    %c0_22 = arith.constant 0 : index
    %58 = vector.load %arg2[%c1_20, %c0_21, %c0_22] : memref<2x32x256xf32, #tpu.memory_space<vmem>>, vector<1x32x256xf32>
    %59 = vector.shape_cast %58 : vector<1x32x256xf32> to vector<32x256xf32>
    %60 = vector.shape_cast %57 : vector<32x256xf32> to vector<1x32x256xf32>
    tpu.vector_store %arg2[%c1_20, %c0_21, %c0_22], %60 {strides = array<i32>} : memref<2x32x256xf32, #tpu.memory_space<vmem>>, vector<1x32x256xf32>,
    return
  }
}

</mosaic_0001>

<bundles_post_ra>
// kernel: ca_layer.1
= control target key start
LH: loop header
LB: loop body
LE: loop exit
PB: predicated region body
PF: predicated region fallthrough
CT: control target
= control target key end

     0   :  { %s357_s15 = smov 126   ;;  %s358_s19 = smov 123   ;;  %vm44_vm0 = vcmask 15360   ;;  %s592_s0 = inlined_call_operand.vmem [shape: f32[2,32,256], index: 0, kind: input, shape index: {}, may-alias: {0,2}]   ;;  %s593_s1 = inlined_call_operand.vmem [shape: f32[32,7], index: 1, kind: input, shape index: {}]   ;;  %s594_s2 = inlined_call_operand.vmem [shape: f32[2,32,256], index: 2, kind: output, shape index: {}, may-alias: {0,2}]  }
   0x1   :  { %v378_v0 = vld [vmem:[%s592_s0 + $0x40] sm:$0xff]  ;;  %v383_v1 = vld [vmem:[%s592_s0 + $0x48] sm:$0xff]  ;;  %v400_v5 = vld [vmem:[%s592_s0 + $0x50] sm:$0xff] }
   0x2   :  { %v388_v2 = vld [vmem:[%s592_s0] sm:$0xff]  ;;  %v172_v3 = vadd.f32 %v383_v1, %v378_v0  ;;  %v395_v4 = vld [vmem:[%s592_s0 + $0x8] sm:$0xff]  ;;  %v405_v6 = vld [vmem:[%s592_s0 + $0x58] sm:$0xff] }
   0x3   :  { %v23_v7 = vadd.f32 %v395_v4, %v388_v2  ;;  %v412_v8 = vld [vmem:[%s592_s0 + $0x10] sm:$0xff]  ;;  %v417_v9 = vld [vmem:[%s592_s0 + $0x18] sm:$0xff]  ;;  %v175_v10 = vadd.f32 %v405_v6, %v400_v5  ;;  %v426_v12 = vld [vmem:[%s592_s0 + $0x60] sm:$0xff] }
   0x4   :  { %173 = vadd.xlane.f32.xlu1 %v172_v3  ;;  %v26_v11 = vadd.f32 %v417_v9, %v412_v8  ;;  %v431_v13 = vld [vmem:[%s592_s0 + $0x68] sm:$0xff]  ;;  %v436_v14 = vld [vmem:[%s592_s0 + $0x20] sm:$0xff]  ;;  %v450_v18 = vld [vmem:[%s592_s0 + $0x70] sm:$0xff] }
   0x5   :  { %24 = vadd.xlane.f32.xlu0 %v23_v7  ;;  %v441_v15 = vld [vmem:[%s592_s0 + $0x28] sm:$0xff]  ;;  %v178_v16 = vadd.f32 %v431_v13, %v426_v12  ;;  %v455_v19 = vld [vmem:[%s592_s0 + $0x78] sm:$0xff]  ;;  %v460_v20 = vld [vmem:[%s592_s0 + $0x30] sm:$0xff] }
   0x6   :  { %v29_v17 = vadd.f32 %v441_v15, %v436_v14  ;;  %v465_v21 = vld [vmem:[%s592_s0 + $0x38] sm:$0xff]  ;;  %v181_v22 = vadd.f32 %v455_v19, %v450_v18  ;;  %v474_v24 = vld [vmem:[%s593_s1] sm:$0xff]  ;;  %v480_v25 = vld [vmem:[%s593_s1 + $0x8] sm:$0xff] }
   0x7   :  { %v32_v23 = vadd.f32 %v465_v21, %v460_v20  ;;  %v486_v26 = vld [vmem:[%s593_s1 + $0x10] sm:$0xff]  ;;  %v492_v27 = vld [vmem:[%s593_s1 + $0x18] sm:$0xff] }
   0x8   :  { %176 = vadd.xlane.f32.xlu1 %v175_v10 }
   0x9   :  { %27 = vadd.xlane.f32.xlu0 %v26_v11 }
   0xc   :  { %179 = vadd.xlane.f32.xlu1 %v178_v16 }
   0xd   :  { %30 = vadd.xlane.f32.xlu0 %v29_v17 }
  0x10   :  { %182 = vadd.xlane.f32.xlu1 %v181_v22 }
  0x11   :  { %33 = vadd.xlane.f32.xlu0 %v32_v23 }
  0x21   :  { %71 = vrot.lane.b32.xlu1 %v474_v24, %s357_s15 }
  0x25   :  { %73 = vrot.lane.b32.xlu1 %v480_v25, %s357_s15 }
  0x27   :  { %59 = vrot.lane.b32.xlu0 %v474_v24, %s358_s19 }
  0x29   :  { %75 = vrot.lane.b32.xlu1 %v486_v26, %s357_s15 }
  0x2b   :  { %77 = vrot.lane.b32.xlu0 %v492_v27, %s357_s15 }
  0x91   :  { %v174_v28 = vpop.xlane.xlu1 %173 }
  0x92   :  { %v184_v29 = vmul.f32 0.00390625, %v174_v28  ;;  %v25_v30 = vpop.xlane.xlu0 %24  ;;  %v64_v28 = vlaneseq }
  0x93   :  { %v36_v35 = vmul.f32 0.00390625, %v25_v30 }
  0x94   :  { %v188_v31 = vmul.f32 %v184_v29, %v474_v24 }
  0x95   :  { %v177_v32 = vpop.xlane.xlu1 %176  ;;  %v40_v44 = vmul.f32 %v36_v35, %v474_v24 }
  0x96   :  { %v185_v33 = vmul.f32 0.00390625, %v177_v32  ;;  %v28_v34 = vpop.xlane.xlu0 %27  ;;  %v192_v37 = vsel %vm44_vm0, %v188_v31, 0.0 }
  0x97   :  { %v37_v36 = vmul.f32 0.00390625, %v28_v34  ;;  %v45_v54 = vsel %vm44_vm0, %v40_v44, 0.0  ;;  %v65_v34 = vshrl.u32 %v64_v28, 7 }
  0x98   :  { %v189_v38 = vmul.f32 %v185_v33, %v480_v25 }
  0x99   :  { %v41_v39 = vmul.f32 %v37_v36, %v480_v25  ;;  %v180_v40 = vpop.xlane.xlu1 %179 }
  0x9a   :  { %v193_v41 = vsel %vm44_vm0, %v189_v38, 0.0  ;;  %v186_v42 = vmul.f32 0.00390625, %v180_v40  ;;  %v31_v43 = vpop.xlane.xlu0 %30  ;;  %v66_v40 = vsub.s32 0, %v65_v34 }
  0x9b   :  { %v194_v45 = vadd.f32 %v193_v41, %v192_v37  ;;  %v38_v46 = vmul.f32 0.00390625, %v31_v43  ;;  %v46_v48 = vsel %vm44_vm0, %v41_v39, 0.0 }
  0x9c   :  { %v190_v47 = vmul.f32 %v186_v42, %v486_v26  ;;  %v47_v58 = vadd.f32 %v46_v48, %v45_v54 }
  0x9d   :  { %v42_v49 = vmul.f32 %v38_v46, %v486_v26  ;;  %v183_v50 = vpop.xlane.xlu1 %182 }
  0x9e   :  { %v195_v51 = vsel %vm44_vm0, %v190_v47, 0.0  ;;  %v187_v52 = vmul.f32 0.00390625, %v183_v50  ;;  %v34_v53 = vpop.xlane.xlu0 %33 }
  0x9f   :  { %v196_v55 = vadd.f32 %v195_v51, %v194_v45  ;;  %v48_v56 = vsel %vm44_vm0, %v42_v49, 0.0  ;;  %v39_v57 = vmul.f32 0.00390625, %v34_v53 }
  0xa0   :  { %v191_v59 = vmul.f32 %v187_v52, %v492_v27  ;;  %v49_v61 = vadd.f32 %v48_v56, %v47_v58 }
  0xa1   :  { %v43_v60 = vmul.f32 %v39_v57, %v492_v27  ;;  %v72_v29 = vpop.permute.xlu1 %71 }
  0xa2   :  { %v197_v62 = vsel %vm44_vm0, %v191_v59, 0.0  ;;  %v60_v35 = vpop.permute.xlu0 %59 }
  0xa3   :  { %v198_v63 = vadd.f32 %v197_v62, %v196_v55  ;;  %v50_v3 = vsel %vm44_vm0, %v43_v60, 0.0 }
  0xa4   :  { %v51_v7 = vadd.f32 %v50_v3, %v49_v61  ;;  %v359_v3 = vmov 4  }
  0xa5   :  { %v199_v10 = vrot.slane %v198_v63, 4  ;;  %v74_v39 = vpop.permute.xlu1 %73  ;;  %324 = vset.pattern.permute.xlu0 %v359_v3  ;;  %323 = vset.pattern.permute.xlu1 %v359_v3 }
  0xa6   :  { %v52_v11 = vrot.slane %v51_v7, 4  ;;  %v78_v53 = vpop.permute.xlu0 %77 }
  0xa7   :  { %v200_v16 = vadd.f32 %v199_v10, %v198_v63 }
  0xa8   :  { %v53_v17 = vadd.f32 %v52_v11, %v51_v7 }
  0xa9   :  { %v201_v22 = vrot.slane %v200_v16, 2  ;;  %v76_v46 = vpop.permute.xlu1 %75 }
  0xaa   :  { %v54_v23 = vrot.slane %v53_v17, 2 }
  0xab   :  { %v202_v30 = vadd.f32 %v201_v22, %v200_v16 }
  0xac   :  { %v55_v31 = vadd.f32 %v54_v23, %v53_v17 }
  0xad   :  { %v203_v32 = vrot.slane %v202_v30, 1 }
  0xae   :  { %v56_v33 = vrot.slane %v55_v31, 1 }
  0xaf   :  { %v204_v36 = vadd.f32 %v203_v32, %v202_v30 }
  0xb0   :  { %v57_v37 = vadd.f32 %v56_v33, %v55_v31 }
  0xb1   :  { %v205_v38 = vadd.f32 %v204_v36, %v60_v35 }
  0xb2   :  { %v62_v41 = vadd.f32 %v60_v35, %v57_v37 }
  0xb3   :  { %v206_v42 = vmax.f32 %v205_v38, 0.0 }
  0xb4   :  { %v63_v43 = vmax.f32 %v62_v41, 0.0 }
  0xb5   :  { %v210_v45 = vrot.slane %v206_v42, %v66_v40 }
  0xb6   :  { %v67_v44 = vrot.slane %v63_v43, %v66_v40 }
  0xb7   :  { %v211_v52 = vmul.f32 %v210_v45, %v72_v29  ;;  %v213_v54 = vmul.f32 %v210_v45, %v76_v46  ;;  %v212_v58 = vmul.f32 %v210_v45, %v74_v39  ;;  %v214_v61 = vmul.f32 %v210_v45, %v78_v53 }
  0xb8   :  { %v84_v47 = vmul.f32 %v74_v39, %v67_v44  ;;  %v83_v48 = vmul.f32 %v72_v29, %v67_v44  ;;  %v85_v49 = vmul.f32 %v76_v46, %v67_v44  ;;  %v86_v55 = vmul.f32 %v78_v53, %v67_v44 }
  0xb9   :  { %v215_v57 = vsel %vm44_vm0, %v211_v52, 0.0  ;;  %v221_v59 = vsel %vm44_vm0, %v213_v54, 0.0  ;;  %v218_v62 = vsel %vm44_vm0, %v212_v58, 0.0  ;;  %v224_v63 = vsel %vm44_vm0, %v214_v61, 0.0 }
  0xba   :  { %v90_v50 = vsel %vm44_vm0, %v84_v47, 0.0  ;;  %v87_v51 = vsel %vm44_vm0, %v83_v48, 0.0  ;;  %v93_v56 = vsel %vm44_vm0, %v85_v49, 0.0  ;;  %v96_v60 = vsel %vm44_vm0, %v86_v55, 0.0 }
  0xbb   :  { %91 = vadd.xlane.f32.xlu0 %v90_v50  ;;  %88 = vadd.xlane.f32.xlu1 %v87_v51 }
  0xbf   :  { %94 = vadd.xlane.f32.xlu0 %v93_v56  ;;  %216 = vadd.xlane.f32.xlu1 %v215_v57 }
  0xc3   :  { %222 = vadd.xlane.f32.xlu1 %v221_v59  ;;  %97 = vadd.xlane.f32.xlu0 %v96_v60 }
  0xc7   :  { %219 = vadd.xlane.f32.xlu0 %v218_v62 }
  0xcb   :  { %225 = vadd.xlane.f32.xlu0 %v224_v63 }
 0x148   :  { %v89_v7 = vpop.xlane.xlu1 %88  ;;  %v92_v10 = vpop.xlane.xlu0 %91 }
 0x149   :  { %v99_v11 = vadd.f32 %v89_v7, %v474_v24  ;;  %v100_v16 = vadd.f32 %v92_v10, %v480_v25 }
 0x14b   :  { %v296_v17 = vmul.f32 -1.442695, %v99_v11  ;;  %v297_v22 = vmul.f32 -1.442695, %v100_v16 }
 0x14c   :  { %v217_v23 = vpop.xlane.xlu1 %216  ;;  %v95_v28 = vpop.xlane.xlu0 %94 }
 0x14d   :  { %325 = vpow2.f32 %v296_v17  ;;  %v227_v29 = vadd.f32 %v217_v23, %v474_v24  ;;  %v101_v30 = vadd.f32 %v95_v28, %v486_v26 }
 0x14e   :  { %327 = vpow2.f32 %v297_v22 }
 0x14f   :  { %v298_v31 = vmul.f32 -1.442695, %v101_v30  ;;  %v308_v33 = vmul.f32 -1.442695, %v227_v29 }
 0x150   :  { %v98_v32 = vpop.xlane.xlu0 %97  ;;  %v223_v35 = vpop.xlane.xlu1 %222 }
 0x151   :  { %v102_v34 = vadd.f32 %v98_v32, %v492_v27  ;;  %329 = vpow2.f32 %v298_v31  ;;  %v229_v39 = vadd.f32 %v223_v35, %v486_v26 }
 0x152   :  { %331 = vpow2.f32 %v308_v33 }
 0x153   :  { %v299_v36 = vmul.f32 -1.442695, %v102_v34  ;;  %v310_v45 = vmul.f32 -1.442695, %v229_v39 }
 0x154   :  { %v220_v37 = vpop.xlane.xlu0 %219 }
 0x155   :  { %v228_v38 = vadd.f32 %v220_v37, %v480_v25  ;;  %333 = vpow2.f32 %v299_v36 }
 0x157   :  { %v326_v40 = vpop.eup %325  ;;  %v309_v24 = vmul.f32 -1.442695, %v228_v38 }
 0x158   :  { %v328_v41 = vpop.eup %327  ;;  %v115_v42 = vadd.f32 1.0, %v326_v40  ;;  %v226_v43 = vpop.xlane.xlu0 %225 }
 0x159   :  { %v116_v44 = vadd.f32 1.0, %v328_v41  ;;  %335 = vpow2.f32 %v309_v24  ;;  %v230_v46 = vadd.f32 %v226_v43, %v492_v27 }
 0x15a   :  { %337 = vrcp.f32 %v115_v42 }
 0x15b   :  { %339 = vrcp.f32 %v116_v44  ;;  %v330_v47 = vpop.eup %329  ;;  %v311_v49 = vmul.f32 -1.442695, %v230_v46 }
 0x15c   :  { %v117_v48 = vadd.f32 1.0, %v330_v47  ;;  %341 = vpow2.f32 %v310_v45  ;;  %v332_v25 = vpop.eup %331 }
 0x15d   :  { %v243_v52 = vadd.f32 1.0, %v332_v25 }
 0x15e   :  { %343 = vrcp.f32 %v117_v48 }
 0x15f   :  { %v334_v26 = vpop.eup %333  ;;  %345 = vpow2.f32 %v311_v49 }
 0x160   :  { %v118_v50 = vadd.f32 1.0, %v334_v26 }
 0x162   :  { %347 = vrcp.f32 %v118_v50 }
 0x163   :  { %v336_v51 = vpop.eup %335  ;;  %349 = vrcp.f32 %v243_v52 }
 0x164   :  { %v338_v53 = vpop.eup %337  ;;  %v244_v55 = vadd.f32 1.0, %v336_v51 }
 0x165   :  { %v340_v54 = vpop.eup %339  ;;  %129 = vperm.xlu1 %323, %v338_v53  }
 0x166   :  { %134 = vperm.xlu0 %324, %v340_v54   ;;  %v342_v27 = vpop.eup %341  ;;  %351 = vrcp.f32 %v244_v55 }
 0x167   :  { %v245_v57 = vadd.f32 1.0, %v342_v27 }
 0x168   :  { %v344_v56 = vpop.eup %343 }
 0x169   :  { %139 = vperm.xlu1 %323, %v344_v56   ;;  %v346_v58 = vpop.eup %345  ;;  %353 = vrcp.f32 %v245_v57 }
 0x16a   :  { %v246_v60 = vadd.f32 1.0, %v346_v58 }
 0x16c   :  { %v348_v59 = vpop.eup %347  ;;  %355 = vrcp.f32 %v246_v60 }
 0x16d   :  { %144 = vperm.xlu1 %323, %v348_v59   ;;  %v350_v61 = vpop.eup %349 }
 0x170   :  { %v352_v62 = vpop.eup %351 }
 0x171   :  { %257 = vperm.xlu1 %323, %v350_v61  }
 0x173   :  { %v354_v63 = vpop.eup %353 }
 0x175   :  { %262 = vperm.xlu1 %323, %v352_v62  }
 0x176   :  { %v356_v3 = vpop.eup %355 }
 0x179   :  { %267 = vperm.xlu1 %323, %v354_v63  }
 0x17d   :  { %272 = vperm.xlu1 %323, %v356_v3  }
 0x1e4   :  { %v130_v7 = vpop.permute.xlu1 %129 }
 0x1e5   :  { %v147_v10 = vmul.f32 %v130_v7, %v388_v2  ;;  %v148_v11 = vmul.f32 %v130_v7, %v395_v4  ;;  %v135_v16 = vpop.permute.xlu0 %134 }
 0x1e6   :  { %v149_v17 = vmul.f32 %v135_v16, %v412_v8  ;;  %v150_v22 = vmul.f32 %v135_v16, %v417_v9 }
 0x1e7   :  { %155 = vst [vmem:[%s594_s2] sm:$0xff] %v147_v10  ;;  %156 = vst [vmem:[%s594_s2 + $0x8] sm:$0xff] %v148_v11 }
 0x1e8   :  { %157 = vst [vmem:[%s594_s2 + $0x10] sm:$0xff] %v149_v17  ;;  %158 = vst [vmem:[%s594_s2 + $0x18] sm:$0xff] %v150_v22  ;;  %v140_v2 = vpop.permute.xlu1 %139 }
 0x1e9   :  { %v151_v4 = vmul.f32 %v140_v2, %v436_v14  ;;  %v152_v8 = vmul.f32 %v140_v2, %v441_v15 }
 0x1eb   :  { %159 = vst [vmem:[%s594_s2 + $0x20] sm:$0xff] %v151_v4  ;;  %160 = vst [vmem:[%s594_s2 + $0x28] sm:$0xff] %v152_v8 }
 0x1ec   :  { %v145_v9 = vpop.permute.xlu1 %144 }
 0x1ed   :  { %v153_v23 = vmul.f32 %v145_v9, %v460_v20  ;;  %v154_v28 = vmul.f32 %v145_v9, %v465_v21 }
 0x1ef   :  { %161 = vst [vmem:[%s594_s2 + $0x30] sm:$0xff] %v153_v23  ;;  %162 = vst [vmem:[%s594_s2 + $0x38] sm:$0xff] %v154_v28 }
 0x1f0   :  { %v258_v14 = vpop.permute.xlu1 %257 }
 0x1f1   :  { %v275_v15 = vmul.f32 %v378_v0, %v258_v14  ;;  %v276_v29 = vmul.f32 %v383_v1, %v258_v14 }
 0x1f3   :  { %312 = vst [vmem:[%s594_s2 + $0x40] sm:$0xff] %v275_v15  ;;  %313 = vst [vmem:[%s594_s2 + $0x48] sm:$0xff] %v276_v29 }
 0x1f4   :  { %v263_v20 = vpop.permute.xlu1 %262 }
 0x1f5   :  { %v277_v21 = vmul.f32 %v400_v5, %v263_v20  ;;  %v278_v30 = vmul.f32 %v405_v6, %v263_v20 }
 0x1f7   :  { %314 = vst [vmem:[%s594_s2 + $0x50] sm:$0xff] %v277_v21  ;;  %315 = vst [vmem:[%s594_s2 + $0x58] sm:$0xff] %v278_v30 }
 0x1f8   :  { %v268_v0 = vpop.permute.xlu1 %267 }
 0x1f9   :  { %v279_v1 = vmul.f32 %v426_v12, %v268_v0  ;;  %v280_v31 = vmul.f32 %v431_v13, %v268_v0 }
 0x1fb   :  { %316 = vst [vmem:[%s594_s2 + $0x60] sm:$0xff] %v279_v1  ;;  %317 = vst [vmem:[%s594_s2 + $0x68] sm:$0xff] %v280_v31 }
 0x1fc   :  { %v273_v5 = vpop.permute.xlu1 %272 }
 0x1fd   :  { %v281_v6 = vmul.f32 %v450_v18, %v273_v5  ;;  %v282_v32 = vmul.f32 %v455_v19, %v273_v5 }
 0x1ff   :  { %318 = vst [vmem:[%s594_s2 + $0x70] sm:$0xff] %v281_v6  ;;  %319 = vst [vmem:[%s594_s2 + $0x78] sm:$0xff] %v282_v32 }

</bundles_post_ra>
